<compile_context>
chip_gen: v5e
topology: v5e:2x2
jax: 0.10.0
libtpu: 0.0.40
codegen_flags: <defaults>
</compile_context>

<pallas_src>
import jax
import jax.numpy as jnp
from jax.experimental import pallas as pl
from jax.experimental.pallas import tpu as pltpu

LANE = 128      # TPU lane width
MIN_TILE = 16   # min batch-tile granularity (bf16 sublane packing)


def _round_up(n, m):
    return ((n + m - 1) // m) * m


def dqn_kernel(x_ref, w1_ref, b1_ref, w2_ref, b2_ref, w3_ref, b3_ref, o_ref):
    """One batch tile of fc1 -> ReLU -> fc2 -> ReLU -> fc3."""
    out_dim = o_ref.shape[-1]

    # In-kernel f32 -> bf16 cast of the activation tile (free under the MXU).
    x = x_ref[...].astype(jnp.bfloat16)                       # (tm, in_dim)

    # fc1 + ReLU (f32 accumulate, f32 bias/ReLU, bf16 for the next matmul)
    h1 = jnp.dot(x, w1_ref[...], preferred_element_type=jnp.float32) + b1_ref[...]
    h1 = jnp.maximum(h1, 0.0).astype(jnp.bfloat16)

    # fc2 + ReLU
    h2 = jnp.dot(h1, w2_ref[...], preferred_element_type=jnp.float32) + b2_ref[...]
    h2 = jnp.maximum(h2, 0.0).astype(jnp.bfloat16)

    # fc3 (no activation): N is padded to 128 lanes for a full-width MXU op,
    # but only the first out_dim columns are stored back to HBM.
    out = jnp.dot(h2, w3_ref[...], preferred_element_type=jnp.float32) + b3_ref[...]
    o_ref[...] = out[:, :out_dim].astype(o_ref.dtype)


def dqn_forward(x, params, *, batch_tile=1024):
    """Run the DQN forward pass with a Pallas TPU kernel.

    x: (B, input_dim) float32
    params: dict with w1 (in,128), b1 (1,128), w2 (128,128), b2 (1,128),
            w3 (128,out), b3 (1,out)  -- weights already transposed vs torch.
    Returns (B, out_dim) float32.
    """
    w1, b1, w2, b2, w3, b3 = (params[k] for k in ("w1", "b1", "w2", "b2", "w3", "b3"))
    B, in_dim = x.shape
    hidden = w1.shape[1]
    out_dim = w3.shape[1]

    # ---- Pad fc3's N dim to a lane-dense 128 (weights/bias only) ----------
    out_pad = _round_up(max(out_dim, LANE), LANE)
    if out_pad != out_dim:
        w3 = jnp.zeros((hidden, out_pad), w3.dtype).at[:, :out_dim].set(w3)
        b3 = jnp.zeros((1, out_pad), b3.dtype).at[:, :out_dim].set(b3)

    # ---- Batch tile: multiple of 16, capped at batch_tile, and sized so the
    # grid has >= 2 steps when the batch allows it (v7x: 2 TensorCores). -----
    B16 = _round_up(B, MIN_TILE)
    tm = min(_round_up(batch_tile, MIN_TILE),
             max(MIN_TILE, _round_up(pl.cdiv(B16, 2), MIN_TILE)))
    grid = (pl.cdiv(B, tm),)   # trailing partial block handled by Pallas

    # ---- Cast weight matmul inputs to bf16 once; biases stay f32 ----------
    w1_bf = w1.astype(jnp.bfloat16)
    w2_bf = w2.astype(jnp.bfloat16)
    w3_bf = w3.astype(jnp.bfloat16)
    b1_f = b1.astype(jnp.float32)
    b2_f = b2.astype(jnp.float32)
    b3_f = b3.astype(jnp.float32)

    # ---- Compiler params: only size VMEM explicitly for very large tiles ---
    cp_kwargs = dict(dimension_semantics=("parallel",))
    if tm > 4096:
        # double-buffered x/out tiles + bf16 weights + f32 intermediates, with
        # ~50% headroom (v5e's default scoped-VMEM limit is 16 MiB).
        vmem_bytes = (
            2 * tm * in_dim * 4
            + 2 * tm * out_dim * 4
            + 2 * 2 * (in_dim * hidden + hidden * hidden + hidden * out_pad)
            + 2 * 4 * (2 * hidden + out_pad)
            + 3 * tm * max(hidden, out_pad) * 4
        )
        cp_kwargs["vmem_limit_bytes"] = int(vmem_bytes * 1.5)

    out = pl.pallas_call(
        dqn_kernel,
        out_shape=jax.ShapeDtypeStruct((B, out_dim), jnp.float32),
        grid=grid,
        in_specs=[
            pl.BlockSpec((tm, in_dim), lambda i: (i, 0)),       # x tile (f32)
            pl.BlockSpec((in_dim, hidden), lambda i: (0, 0)),   # w1 (grid-invariant)
            pl.BlockSpec((1, hidden), lambda i: (0, 0)),        # b1
            pl.BlockSpec((hidden, hidden), lambda i: (0, 0)),   # w2
            pl.BlockSpec((1, hidden), lambda i: (0, 0)),        # b2
            pl.BlockSpec((hidden, out_pad), lambda i: (0, 0)),  # w3 (padded N)
            pl.BlockSpec((1, out_pad), lambda i: (0, 0)),       # b3 (padded N)
        ],
        out_specs=pl.BlockSpec((tm, out_dim), lambda i: (i, 0)),
        compiler_params=pltpu.CompilerParams(**cp_kwargs),
    )(x, w1_bf, b1_f, w2_bf, b2_f, w3_bf, b3_f)

    return out


def init_params(key, input_dim, output_dim, hidden=128):
    """Deterministic synthetic parameters (PyTorch nn.Linear-style uniform init),
    stored as (in_features, out_features) for the kernel."""
    ks = jax.random.split(key, 6)

    def linear(kw, kb, fan_in, fan_out):
        bound = 1.0 / jnp.sqrt(fan_in)
        w = jax.random.uniform(kw, (fan_in, fan_out), jnp.float32, -bound, bound)
        b = jax.random.uniform(kb, (1, fan_out), jnp.float32, -bound, bound)
        return w, b

    w1, b1 = linear(ks[0], ks[1], input_dim, hidden)
    w2, b2 = linear(ks[2], ks[3], hidden, hidden)
    w3, b3 = linear(ks[4], ks[5], hidden, output_dim)
    return {"w1": w1, "b1": b1, "w2": w2, "b2": b2, "w3": w3, "b3": b3}


def dqn_reference_f32(x, p):
    """Pure-JAX f32 reference of the PyTorch forward."""
    h1 = jnp.maximum(x @ p["w1"] + p["b1"], 0.0)
    h2 = jnp.maximum(h1 @ p["w2"] + p["b2"], 0.0)
    return h2 @ p["w3"] + p["b3"]


def dqn_reference_bf16(x, p):
    """Reference mirroring the kernel's bf16-matmul / f32-accumulate math."""
    def mm(a, w):
        return jnp.dot(a.astype(jnp.bfloat16), w.astype(jnp.bfloat16),
                       preferred_element_type=jnp.float32)
    h1 = jnp.maximum(mm(x, p["w1"]) + p["b1"], 0.0)
    h2 = jnp.maximum(mm(h1, p["w2"]) + p["b2"], 0.0)
    return mm(h2, p["w3"]) + p["b3"]


if __name__ == "__main__":
    key = jax.random.PRNGKey(0)
    k_params, k_x1, k_x2 = jax.random.split(key, 3)

    input_dim, output_dim = 16, 4
    params = init_params(k_params, input_dim, output_dim)

    # Small batch (single partial block).
    x_small = jax.random.normal(k_x1, (8, input_dim), jnp.float32)
    out_small = jax.block_until_ready(dqn_forward(x_small, params))
    assert out_small.shape == (8, output_dim)
    assert jnp.allclose(out_small, dqn_reference_bf16(x_small, params),
                        atol=1e-3, rtol=1e-3), "mismatch vs bf16 reference"
    assert jnp.allclose(out_small, dqn_reference_f32(x_small, params),
                        atol=5e-2, rtol=5e-2), "mismatch vs f32 reference"

    # Ragged batch (exercises the >=2-step grid and trailing partial block).
    x_ragged = jax.random.normal(k_x2, (50, input_dim), jnp.float32)
    out_ragged = jax.block_until_ready(dqn_forward(x_ragged, params))
    assert out_ragged.shape == (50, output_dim)
    assert jnp.allclose(out_ragged, dqn_reference_bf16(x_ragged, params),
                        atol=1e-3, rtol=1e-3), "mismatch vs bf16 reference (ragged)"
    assert jnp.allclose(out_ragged, dqn_reference_f32(x_ragged, params),
                        atol=5e-2, rtol=5e-2), "mismatch vs f32 reference (ragged)"

    print("KERNEL_OK")
</pallas_src>

<mosaic_0001>
module attributes {stable_mosaic.version = 11 : i64} {
  func.func @dqn_kernel(%arg0: i32, %arg1: memref<16x16xf32, #tpu.memory_space<vmem>>, %arg2: memref<16x128xbf16, #tpu.memory_space<vmem>>, %arg3: memref<1x128xf32, #tpu.memory_space<vmem>>, %arg4: memref<128x128xbf16, #tpu.memory_space<vmem>>, %arg5: memref<1x128xf32, #tpu.memory_space<vmem>>, %arg6: memref<128x128xbf16, #tpu.memory_space<vmem>>, %arg7: memref<1x128xf32, #tpu.memory_space<vmem>>, %arg8: memref<16x4xf32, #tpu.memory_space<vmem>>) attributes {dimension_semantics = [#tpu.dimension_semantics<parallel>], iteration_bounds = array<i64: 1>, scalar_prefetch = 0 : i64, scratch_operands = 0 : i64, tpu.core_type = #tpu.core_type<tc>, window_params = [{transform_indices = @transform_0, window_bounds = array<i64: 16, 16>}, {pipeline_mode = #tpu.pipeline_mode<synchronous>, transform_indices = @transform_1, window_bounds = array<i64: 16, 128>}, {pipeline_mode = #tpu.pipeline_mode<synchronous>, transform_indices = @transform_2, window_bounds = array<i64: 1, 128>}, {pipeline_mode = #tpu.pipeline_mode<synchronous>, transform_indices = @transform_3, window_bounds = array<i64: 128, 128>}, {pipeline_mode = #tpu.pipeline_mode<synchronous>, transform_indices = @transform_4, window_bounds = array<i64: 1, 128>}, {pipeline_mode = #tpu.pipeline_mode<synchronous>, transform_indices = @transform_5, window_bounds = array<i64: 128, 128>}, {pipeline_mode = #tpu.pipeline_mode<synchronous>, transform_indices = @transform_6, window_bounds = array<i64: 1, 128>}, {transform_indices = @transform_7, window_bounds = array<i64: 16, 4>}]} {
    %c0 = arith.constant 0 : index
    %c0_0 = arith.constant 0 : index
    %0 = vector.load %arg1[%c0, %c0_0] : memref<16x16xf32, #tpu.memory_space<vmem>>, vector<16x16xf32>
    %1 = arith.truncf %0 : vector<16x16xf32> to vector<16x16xbf16>
    %c0_1 = arith.constant 0 : index
    %c0_2 = arith.constant 0 : index
    %2 = vector.load %arg2[%c0_1, %c0_2] : memref<16x128xbf16, #tpu.memory_space<vmem>>, vector<16x128xbf16>
    %cst = arith.constant dense<0.000000e+00> : vector<16x128xf32>
    %3 = tpu.matmul %1, %2, %cst {dimension_numbers = #tpu.dot_dimension_numbers<[1], [0], [0], [1], [0, 0, 1, 1], [], []>} : vector<16x16xbf16>, vector<16x128xbf16>, vector<16x128xf32> -> vector<16x128xf32>
    %c0_3 = arith.constant 0 : index
    %c0_4 = arith.constant 0 : index
    %4 = vector.load %arg3[%c0_3, %c0_4] : memref<1x128xf32, #tpu.memory_space<vmem>>, vector<1x128xf32>
    %5 = vector.broadcast %4 : vector<1x128xf32> to vector<16x128xf32>
    %6 = arith.addf %3, %5 : vector<16x128xf32>
    %cst_5 = arith.constant 0.000000e+00 : f32
    %7 = vector.broadcast %cst_5 : f32 to vector<16x128xf32>
    %8 = arith.maximumf %6, %7 : vector<16x128xf32>
    %9 = arith.truncf %8 : vector<16x128xf32> to vector<16x128xbf16>
    %c0_6 = arith.constant 0 : index
    %c0_7 = arith.constant 0 : index
    %10 = vector.load %arg4[%c0_6, %c0_7] : memref<128x128xbf16, #tpu.memory_space<vmem>>, vector<128x128xbf16>
    %cst_8 = arith.constant dense<0.000000e+00> : vector<16x128xf32>
    %11 = tpu.matmul %9, %10, %cst_8 {dimension_numbers = #tpu.dot_dimension_numbers<[1], [0], [0], [1], [0, 0, 1, 1], [], []>} : vector<16x128xbf16>, vector<128x128xbf16>, vector<16x128xf32> -> vector<16x128xf32>
    %c0_9 = arith.constant 0 : index
    %c0_10 = arith.constant 0 : index
    %12 = vector.load %arg5[%c0_9, %c0_10] : memref<1x128xf32, #tpu.memory_space<vmem>>, vector<1x128xf32>
    %13 = vector.broadcast %12 : vector<1x128xf32> to vector<16x128xf32>
    %14 = arith.addf %11, %13 : vector<16x128xf32>
    %cst_11 = arith.constant 0.000000e+00 : f32
    %15 = vector.broadcast %cst_11 : f32 to vector<16x128xf32>
    %16 = arith.maximumf %14, %15 : vector<16x128xf32>
    %17 = arith.truncf %16 : vector<16x128xf32> to vector<16x128xbf16>
    %c0_12 = arith.constant 0 : index
    %c0_13 = arith.constant 0 : index
    %18 = vector.load %arg6[%c0_12, %c0_13] : memref<128x128xbf16, #tpu.memory_space<vmem>>, vector<128x128xbf16>
    %cst_14 = arith.constant dense<0.000000e+00> : vector<16x128xf32>
    %19 = tpu.matmul %17, %18, %cst_14 {dimension_numbers = #tpu.dot_dimension_numbers<[1], [0], [0], [1], [0, 0, 1, 1], [], []>} : vector<16x128xbf16>, vector<128x128xbf16>, vector<16x128xf32> -> vector<16x128xf32>
    %c0_15 = arith.constant 0 : index
    %c0_16 = arith.constant 0 : index
    %20 = vector.load %arg7[%c0_15, %c0_16] : memref<1x128xf32, #tpu.memory_space<vmem>>, vector<1x128xf32>
    %21 = vector.broadcast %20 : vector<1x128xf32> to vector<16x128xf32>
    %22 = arith.addf %19, %21 : vector<16x128xf32>
    %23 = vector.extract_strided_slice %22 {offsets = [0, 0], sizes = [16, 4], strides = [1, 1]} : vector<16x128xf32> to vector<16x4xf32>
    %c0_17 = arith.constant 0 : index
    %c0_18 = arith.constant 0 : index
    %24 = vector.load %arg8[%c0_17, %c0_18] : memref<16x4xf32, #tpu.memory_space<vmem>>, vector<16x4xf32>
    tpu.vector_store %arg8[%c0_17, %c0_18], %23 {strides = array<i32>} : memref<16x4xf32, #tpu.memory_space<vmem>>, vector<16x4xf32>,
    return
  }
  func.func @transform_0(%arg0: i32) -> (i32, i32) {
    %c0_i32 = arith.constant 0 : i32
    %c0_i32_0 = arith.constant 0 : i32
    return %arg0, %c0_i32 : i32, i32
  }
  func.func @transform_1(%arg0: i32) -> (i32, i32) {
    %c0_i32 = arith.constant 0 : i32
    %c0_i32_0 = arith.constant 0 : i32
    %c0_i32_1 = arith.constant 0 : i32
    return %c0_i32, %c0_i32_0 : i32, i32
  }
  func.func @transform_2(%arg0: i32) -> (i32, i32) {
    %c0_i32 = arith.constant 0 : i32
    %c0_i32_0 = arith.constant 0 : i32
    %c0_i32_1 = arith.constant 0 : i32
    return %c0_i32, %c0_i32_0 : i32, i32
  }
  func.func @transform_3(%arg0: i32) -> (i32, i32) {
    %c0_i32 = arith.constant 0 : i32
    %c0_i32_0 = arith.constant 0 : i32
    %c0_i32_1 = arith.constant 0 : i32
    return %c0_i32, %c0_i32_0 : i32, i32
  }
  func.func @transform_4(%arg0: i32) -> (i32, i32) {
    %c0_i32 = arith.constant 0 : i32
    %c0_i32_0 = arith.constant 0 : i32
    %c0_i32_1 = arith.constant 0 : i32
    return %c0_i32, %c0_i32_0 : i32, i32
  }
  func.func @transform_5(%arg0: i32) -> (i32, i32) {
    %c0_i32 = arith.constant 0 : i32
    %c0_i32_0 = arith.constant 0 : i32
    %c0_i32_1 = arith.constant 0 : i32
    return %c0_i32, %c0_i32_0 : i32, i32
  }
  func.func @transform_6(%arg0: i32) -> (i32, i32) {
    %c0_i32 = arith.constant 0 : i32
    %c0_i32_0 = arith.constant 0 : i32
    %c0_i32_1 = arith.constant 0 : i32
    return %c0_i32, %c0_i32_0 : i32, i32
  }
  func.func @transform_7(%arg0: i32) -> (i32, i32) {
    %c0_i32 = arith.constant 0 : i32
    %c0_i32_0 = arith.constant 0 : i32
    return %arg0, %c0_i32 : i32, i32
  }
}

</mosaic_0001>

<bundles_post_ra>
// kernel: tpu_custom_call.1
= control target key start
LH: loop header
LB: loop body
LE: loop exit
PB: predicated region body
PF: predicated region fallthrough
CT: control target
= control target key end

     0   :  { %12 = vsyncpa [#allocation3], 0  ;;  %s611_s0 = inlined_call_operand.hbm [shape: f32[8,16], index: 0, kind: input, shape index: {}]   ;;  %s612_s1 = inlined_call_operand.hbm [shape: bf16[16,128], index: 1, kind: input, shape index: {}]   ;;  %s613_s2 = inlined_call_operand.vmem [shape: f32[1,128], index: 2, kind: input, shape index: {}]   ;;  %s614_s3 = inlined_call_operand.hbm [shape: bf16[128,128], index: 3, kind: input, shape index: {}]   ;;  %s615_s4 = inlined_call_operand.vmem [shape: f32[1,128], index: 4, kind: input, shape index: {}]   ;;  %s616_s5 = inlined_call_operand.hbm [shape: bf16[128,128], index: 5, kind: input, shape index: {}]   ;;  %s617_s6 = inlined_call_operand.vmem [shape: f32[1,128], index: 6, kind: input, shape index: {}]   ;;  %s618_s7 = inlined_call_operand.vmem [shape: f32[8,4], index: 7, kind: output, shape index: {}]  }
   0x1   :  { %13 = vsyncpa [#allocation5], 0 }
   0x2   :  { %14 = vsyncpa [#allocation8], 0  ;;  %s32_s26 = sshll.u32 %s612_s1, 4  ;;  %s33_s26 = int_to_ptr.hbm [resolvable:$true] %s32_s26 }
   0x3   :  { %18 = vsyncadd [#allocation3], 128  ;;  %s539_s27 = smov [#allocation4]   ;;  %s19_s8 = sshll.u32 %s611_s0, 4  ;;  %s20_s8 = int_to_ptr.hbm [resolvable:$true] %s19_s8 }
   0x4   :  { %s34_s28 = sshll.u32 %s539_s27, 4  ;;  %s540_s9 = smov 64   ;;  %s35_s28 = int_to_ptr.vmem [resolvable:$true] %s34_s28 }
   0x5   :  { %s541_s10 = smov 4   ;;  %s542_s11 = smov [#allocation2]  }
   0x6   :  { %40 = dma.hbm_to_vmem [thread:$0]  %s33_s26, 128, %s35_s28, [#allocation5], %s540_s9, %s540_s9, %s541_s10  }
   0x7   :  { %s21_s12 = sshll.u32 %s542_s11, 4  ;;  %s543_s13 = smov 128   ;;  %s22_s12 = int_to_ptr.vmem [resolvable:$true] %s21_s12 }
   0x8   :  { %s544_s14 = smov 8   ;;  %s47_s16 = sshll.u32 %s614_s3, 4  ;;  %s48_s16 = int_to_ptr.hbm [resolvable:$true] %s47_s16 }
   0x9   :  { %27 = dma.hbm_to_vmem [thread:$0]  %s20_s8, 128, %s22_s12, [#allocation3], %s543_s13, %s543_s13, %s544_s14  }
   0xa   :  { %s545_s17 = smov [#allocation6]   ;;  %s62_s20 = sshll.u32 %s616_s5, 4  ;;  %s63_s20 = int_to_ptr.hbm [resolvable:$true] %s62_s20 }
   0xb   :  { %s49_s18 = sshll.u32 %s545_s17, 4  ;;  %s546_s21 = smov [#allocation7]   ;;  %s50_s18 = int_to_ptr.vmem [resolvable:$true] %s49_s18 }
   0xc   :  { %55 = dma.hbm_to_vmem [thread:$0]  %s48_s16, 1024, %s50_s18, [#allocation5], %s540_s9, %s540_s9, %s541_s10  }
   0xd   :  { %s64_s22 = sshll.u32 %s546_s21, 4  ;;  %s65_s22 = int_to_ptr.vmem [resolvable:$true] %s64_s22 }
   0xe   :  { %70 = dma.hbm_to_vmem [thread:$0]  %s63_s20, 1024, %s65_s22, [#allocation8], %s540_s9, %s540_s9, %s541_s10  }
   0xf   :  { %533 = dma.done.wait [#allocation3], 256  }
  0x10   :  { %534 = vsyncadd [#allocation3], 4294967040 }
  0x11   :  { %535 = dma.done.wait [#allocation5], 1152  }
  0x12   :  { %536 = vsyncadd [#allocation5], 4294966144 }
  0x13   :  { %537 = dma.done.wait [#allocation8], 1024  }
  0x14   :  { %538 = vsyncadd [#allocation8], 4294966272  ;;  %v409_v0 = vld [vmem:[#allocation4] sm:$0xff]  ;;  %v90_v1 = vld [vmem:[#allocation2] sm:$0xff]  ;;  %vm105_vm0 = vcmask 130048   ;;  %vm293_vm1 = vcmask 31744  }
  0x15   :  { %v91_v2 = vld [vmem:[#allocation2 + $0x8] sm:$0xff]  ;;  %v417_v4 = vld [vmem:[#allocation6 + $0x38] sm:$0xff]  ;;  %116 = vmatpush.bf16.msra.mxu0 %v409_v0  ;;  %v415_v6 = vld [vmem:[#allocation6 + $0x28] sm:$0xff] }
  0x16   :  { %v92_v3 = vpack.c.bf16 %v91_v2, %v90_v1  ;;  %194 = vmatpush.bf16.msra.mxu1 %v417_v4  ;;  %v416_v5 = vld [vmem:[#allocation6 + $0x30] sm:$0xff]  ;;  %v414_v7 = vld [vmem:[#allocation6 + $0x20] sm:$0xff]  ;;  %v413_v8 = vld [vmem:[#allocation6 + $0x18] sm:$0xff] }
  0x17   :  { %v412_v9 = vld [vmem:[#allocation6 + $0x10] sm:$0xff]  ;;  %v411_v10 = vld [vmem:[#allocation6 + $0x8] sm:$0xff]  ;;  %v410_v11 = vld [vmem:[#allocation6] sm:$0xff] }
  0x18   :  { %344 = vmatmul.msk.bf16.vlgmr.msra.gmra.mxu0 %vm105_vm0, %v92_v3  ;;  %v425_v12 = vld [vmem:[#allocation7 + $0x38] sm:$0xff]  ;;  %v424_v13 = vld [vmem:[#allocation7 + $0x30] sm:$0xff]  ;;  %v423_v14 = vld [vmem:[#allocation7 + $0x28] sm:$0xff] }
  0x19   :  { %279 = vmatpush.bf16.msra.mxu2 %v425_v12  ;;  %v422_v15 = vld [vmem:[#allocation7 + $0x20] sm:$0xff]  ;;  %v434_v17 = vld [vmem:[%s613_s2] ss:$0 sm:$0xff]  ;;  %v421_v24 = vld [vmem:[#allocation7 + $0x18] sm:$0xff] }
  0x1a   :  { %195 = vmatpush.bf16.msra.mxu1 %v416_v5  ;;  %v420_v25 = vld [vmem:[#allocation7 + $0x10] sm:$0xff]  ;;  %v419_v26 = vld [vmem:[#allocation7 + $0x8] sm:$0xff]  ;;  %v418_v27 = vld [vmem:[#allocation7] sm:$0xff] }
  0x1b   :  { %v435_v29 = vld [vmem:[%s615_s4] ss:$0 sm:$0xff] }
  0x1c   :  { %v436_v36 = vld [vmem:[%s617_s6] ss:$0 sm:$0xff] }
  0x1d   :  { %280 = vmatpush.bf16.msra.mxu2 %v424_v13 }
  0x1e   :  { %196 = vmatpush.bf16.msra.mxu1 %v415_v6 }
  0x21   :  { %281 = vmatpush.bf16.msra.mxu2 %v423_v14 }
  0x22   :  { %197 = vmatpush.bf16.msra.mxu1 %v414_v7 }
  0x25   :  { %282 = vmatpush.bf16.msra.mxu2 %v422_v15 }
  0x26   :  { %198 = vmatpush.bf16.msra.mxu1 %v413_v8 }
  0x29   :  { %283 = vmatpush.bf16.msra.mxu2 %v421_v24 }
  0x2a   :  { %199 = vmatpush.bf16.msra.mxu1 %v412_v9 }
  0x2d   :  { %284 = vmatpush.bf16.msra.mxu2 %v420_v25 }
  0x2e   :  { %200 = vmatpush.bf16.msra.mxu1 %v411_v10 }
  0x31   :  { %285 = vmatpush.bf16.msra.mxu2 %v419_v26 }
  0x32   :  { %201 = vmatpush.bf16.msra.mxu1 %v410_v11 }
  0x35   :  { %286 = vmatpush.bf16.msra.mxu2 %v418_v27 }
  0x95   :  { %v118_v16 = vpop.f32.mrf.mxu0 }
  0x96   :  { %v119_v18 = vadd.f32 %v434_v17, %v118_v16 }
  0x98   :  { %v123_v21 = vmax.f32 %v119_v18, 0.0 }
  0x9d   :  { %v120_v19 = vpop.f32.mrf.mxu0 }
  0x9e   :  { %v121_v20 = vadd.f32 %v434_v17, %v120_v19 }
  0xa0   :  { %v124_v22 = vmax.f32 %v121_v20, 0.0 }
  0xa2   :  { %v125_v23 = vpack.c.bf16 %v124_v22, %v123_v21 }
  0xa4   :  { %202 = vmatmul.bf16.vlgmr.msra.gmra.mxu1 %v125_v23 }
 0x121   :  { %v203_v28 = vpop.f32.mrf.mxu1 }
 0x122   :  { %v204_v30 = vadd.f32 %v435_v29, %v203_v28 }
 0x124   :  { %v208_v33 = vmax.f32 %v204_v30, 0.0 }
 0x129   :  { %v205_v31 = vpop.f32.mrf.mxu1 }
 0x12a   :  { %v206_v32 = vadd.f32 %v435_v29, %v205_v31 }
 0x12c   :  { %v209_v34 = vmax.f32 %v206_v32, 0.0 }
 0x12e   :  { %v210_v35 = vpack.c.bf16 %v209_v34, %v208_v33 }
 0x130   :  { %287 = vmatmul.bf16.vlgmr.msra.gmra.mxu2 %v210_v35 }
 0x1b3   :  { %v288_v37 = vpop.f32.mrf.mxu2 }
 0x1b4   :  { %v289_v38 = vadd.f32 %v436_v36, %v288_v37 }
 0x1b6   :  { %294 = vst.msk [vmem:[#allocation9] sm:$0xff] %vm293_vm1, %v289_v38 }
 0x1bb   :  { %v290_v39 = vpop.f32.mrf.mxu2 }
 0x1bd   :  { %v326_v40 = vld [vmem:[#allocation9] sm:$0xff] }
 0x1be   :  { %327 = vst [vmem:[%s618_s7] sm:$0xff] %v326_v40 }
 0x1bf   :  { %333 = vsyncpa [#allocation3], 1 }
 0x1c0   :  { %334 = vsyncpa [#allocation5], 1 }
 0x1c1   :  { %335 = vsyncpa [#allocation8], 1 }

</bundles_post_ra>
